<compile_context>
chip_gen: v7x
topology: tpu7x:2x2x1
jax: 0.10.0
libtpu: 0.0.40
codegen_flags: <defaults>
</compile_context>

<pallas_src>
import functools
import math

import jax
import jax.numpy as jnp
from jax.experimental import pallas as pl
from jax.experimental.pallas import tpu as pltpu

_LANES = 128       # lane width of the flattened 2-D view
_TM_MAX = 2048     # rows per block: 2048 * 128 * 4B = 1 MiB per f32 input block
_NCORES = 2        # leading parallel grid axis (v7x has 2 TensorCores)


def _cdiv(a, b):
    return -(-a // b)


def _round_up(a, b):
    return _cdiv(a, b) * b


def _to_lane_dense(x):
    """Flatten x into a lane-dense (R, 128) view (pads only the last lane row)."""
    flat = jnp.reshape(x, (-1,))
    n = flat.shape[0]
    pad = (-n) % _LANES
    if pad:
        # Only hit when the element count is not a multiple of 128.
        flat = jnp.pad(flat, (0, pad))
    return flat.reshape((n + pad) // _LANES, _LANES)


# --------------------------------------------------------------------------
# Kernels
# --------------------------------------------------------------------------
def _sq_err_kernel(o_ref, t_ref, res_ref):
    """average='none': elementwise squared error for one (TM, 128) block."""
    d = o_ref[...].astype(jnp.float32) - t_ref[...].astype(jnp.float32)
    res_ref[...] = (d * d).astype(res_ref.dtype)


def _masked_sum_kernel(o_ref, t_ref, m_ref, lsum_ref, msum_ref, *, tm, inner, r_valid):
    """Per-core partial sums of (out-tgt)^2 * mask and mask over one block."""
    c = pl.program_id(0)
    i = pl.program_id(1)

    @pl.when(i == 0)
    def _():
        lsum_ref[...] = jnp.zeros_like(lsum_ref)
        msum_ref[...] = jnp.zeros_like(msum_ref)

    # Logical (unclamped) row offset of this tile; rows >= r_valid are padding
    # or out-of-bounds (unspecified data) and are zeroed via select.
    row0 = (c * inner + i) * tm
    row = jax.lax.broadcasted_iota(jnp.int32, o_ref.shape, 0) + row0
    valid = row < r_valid

    o = o_ref[...].astype(jnp.float32)
    t = t_ref[...].astype(jnp.float32)
    m = m_ref[...].astype(jnp.float32)
    sq = (o - t) * (o - t)

    lsum_ref[...] = lsum_ref[...] + jnp.sum(jnp.where(valid, sq * m, 0.0))
    msum_ref[...] = msum_ref[...] + jnp.sum(jnp.where(valid, m, 0.0))


def _plain_sum_kernel(o_ref, t_ref, lsum_ref, *, tm, inner, r_valid):
    """Per-core partial sum of (out-tgt)^2 over one block (mask=None path)."""
    c = pl.program_id(0)
    i = pl.program_id(1)

    @pl.when(i == 0)
    def _():
        lsum_ref[...] = jnp.zeros_like(lsum_ref)

    row0 = (c * inner + i) * tm
    row = jax.lax.broadcasted_iota(jnp.int32, o_ref.shape, 0) + row0
    valid = row < r_valid

    o = o_ref[...].astype(jnp.float32)
    t = t_ref[...].astype(jnp.float32)
    sq = (o - t) * (o - t)
    lsum_ref[...] = lsum_ref[...] + jnp.sum(jnp.where(valid, sq, 0.0))


# --------------------------------------------------------------------------
# pallas_call wrappers
# --------------------------------------------------------------------------
def _call_reduce(kernel, arrays, num_outputs, tm, inner, num_tiles, ncores):
    lanes = arrays[0].shape[1]

    def row_map(c, i):
        # Clamp so the fetched block is always a real (or standard last-partial)
        # block; logically out-of-range tiles are zeroed by the in-kernel mask.
        return (jnp.minimum(c * inner + i, num_tiles - 1), 0)

    in_specs = [pl.BlockSpec((tm, lanes), row_map) for _ in arrays]
    out_specs = tuple(pl.BlockSpec((1, 8, 128), lambda c, i: (c, 0, 0))
                      for _ in range(num_outputs))
    out_shape = tuple(jax.ShapeDtypeStruct((ncores, 8, 128), jnp.float32)
                      for _ in range(num_outputs))

    return pl.pallas_call(
        kernel,
        out_shape=out_shape,
        grid_spec=pltpu.PrefetchScalarGridSpec(
            num_scalar_prefetch=0,
            grid=(ncores, inner),
            in_specs=in_specs,
            out_specs=out_specs,
        ),
        compiler_params=pltpu.CompilerParams(
            dimension_semantics=("parallel", "arbitrary")),
    )(*arrays)


class MSELoss:
    """Pallas-TPU forward of jactorch MSELoss (AverageLoss reduction rules)."""

    def __init__(self, average='valid', row_tile=None):
        assert average in ('none', 'all', 'valid')
        self.average = average
        self._row_tile = row_tile      # override for testing; None -> auto

    def __call__(self, output, target, mask=None):
        assert output.shape == target.shape
        orig_shape = output.shape
        n = int(math.prod(orig_shape))

        out2 = _to_lane_dense(output)
        tgt2 = _to_lane_dense(target)
        r = out2.shape[0]

        tm = self._row_tile or min(_TM_MAX, _round_up(r, 8))
        num_tiles = _cdiv(r, tm)

        if self.average == 'none':
            # AverageLoss returns the raw elementwise loss (mask not applied).
            res_dtype = jnp.result_type(output.dtype, target.dtype)
            res2 = pl.pallas_call(
                _sq_err_kernel,
                out_shape=jax.ShapeDtypeStruct((r, _LANES), res_dtype),
                grid_spec=pltpu.PrefetchScalarGridSpec(
                    num_scalar_prefetch=0,
                    grid=(num_tiles,),
                    in_specs=[pl.BlockSpec((tm, _LANES), lambda i: (i, 0))] * 2,
                    out_specs=pl.BlockSpec((tm, _LANES), lambda i: (i, 0)),
                ),
                compiler_params=pltpu.CompilerParams(
                    dimension_semantics=("parallel",)),
            )(out2, tgt2)
            res_flat = res2.reshape(-1)
            if res_flat.shape[0] != n:
                res_flat = res_flat[:n]
            return res_flat.reshape(orig_shape)

        inner = _cdiv(num_tiles, _NCORES)

        if mask is not None:
            assert mask.shape == orig_shape
            msk = mask
            if not jnp.issubdtype(msk.dtype, jnp.floating):
                msk = msk.astype(jnp.float32)
            msk2 = _to_lane_dense(msk)
            kernel = functools.partial(_masked_sum_kernel, tm=tm, inner=inner, r_valid=r)
            lsum, msum = _call_reduce(kernel, [out2, tgt2, msk2], 2,
                                      tm, inner, num_tiles, _NCORES)
            loss_sum = jnp.sum(lsum[:, 0, 0])     # combine per-core partial sums
            mask_sum = jnp.sum(msum[:, 0, 0])
            if self.average == 'all':
                return loss_sum / n
            return loss_sum / jnp.maximum(mask_sum, 0.1)   # 'valid'

        kernel = functools.partial(_plain_sum_kernel, tm=tm, inner=inner, r_valid=r)
        (lsum,) = _call_reduce(kernel, [out2, tgt2], 1, tm, inner, num_tiles, _NCORES)
        return jnp.sum(lsum[:, 0, 0]) / n


# --------------------------------------------------------------------------
# Pure-JAX reference + test
# --------------------------------------------------------------------------
def _ref_mse(output, target, mask=None, average='valid'):
    loss = (output.astype(jnp.float32) - target.astype(jnp.float32)) ** 2
    if average == 'none':
        return loss
    if mask is not None:
        m = mask.astype(jnp.float32)
        loss = loss * m
        if average == 'all':
            return loss.mean()
        return loss.sum() / jnp.maximum(m.sum(), 0.1)
    return loss.mean()


if __name__ == "__main__":
    key = jax.random.PRNGKey(0)
    k1, k2, k3, k4, k5 = jax.random.split(key, 5)

    # primary case: batch=2, channels=4, spatial=16x16 (n = 2048), f32
    shape = (2, 4, 16, 16)
    output = jax.random.normal(k1, shape, jnp.float32)
    target = jax.random.normal(k2, shape, jnp.float32)
    mask = (jax.random.uniform(k3, shape) > 0.3).astype(jnp.float32)

    checks = []
    for average in ('valid', 'all'):
        loss_fn = MSELoss(average=average)
        got = jax.block_until_ready(loss_fn(output, target, mask))
        checks.append((f"f32/{average}/mask", got, _ref_mse(output, target, mask, average)))
        got_nm = jax.block_until_ready(loss_fn(output, target, None))
        checks.append((f"f32/{average}/nomask", got_nm, _ref_mse(output, target, None, average)))

    # 'none' (unreduced) path
    got_none = jax.block_until_ready(MSELoss(average='none')(output, target, mask))
    ref_none = _ref_mse(output, target, mask, 'none')
    assert got_none.shape == shape
    assert jnp.allclose(got_none.astype(jnp.float32), ref_none, rtol=1e-5, atol=1e-6)

    # ragged case: exercises lane padding, OOB tail-row masking and
    # multi-step per-core accumulation (small row_tile on purpose).
    shape2 = (3, 5, 40, 40)                      # 24000 elems, not a multiple of 128
    o2 = jax.random.normal(k4, shape2, jnp.float32)
    t2 = jax.random.normal(k5, shape2, jnp.float32)
    m2 = (jax.random.uniform(k3, shape2) > 0.5).astype(jnp.float32)
    got2 = jax.block_until_ready(MSELoss(average='valid', row_tile=8)(o2, t2, m2))
    checks.append(("f32/valid/ragged", got2, _ref_mse(o2, t2, m2, 'valid')))

    # bf16 inputs: DMA'd as bf16, upcast to f32 inside the kernel
    ob = output.astype(jnp.bfloat16)
    tb = target.astype(jnp.bfloat16)
    got_b = jax.block_until_ready(MSELoss(average='valid')(ob, tb, mask))
    checks.append(("bf16/valid/mask", got_b, _ref_mse(ob, tb, mask, 'valid')))

    for name, got, ref in checks:
        assert jnp.allclose(got, ref, rtol=1e-4, atol=1e-6), (name, got, ref)

    print("KERNEL_OK")
</pallas_src>

<mosaic_0001>
module attributes {stable_mosaic.version = 11 : i64} {
  func.func @_masked_sum_kernel(%arg0: i32, %arg1: i32, %arg2: memref<16x128xf32, #tpu.memory_space<vmem>>, %arg3: memref<16x128xf32, #tpu.memory_space<vmem>>, %arg4: memref<16x128xf32, #tpu.memory_space<vmem>>, %arg5: memref<1x8x128xf32, #tpu.memory_space<vmem>>, %arg6: memref<1x8x128xf32, #tpu.memory_space<vmem>>) attributes {dimension_semantics = [#tpu.dimension_semantics<parallel>, #tpu.dimension_semantics<arbitrary>], iteration_bounds = array<i64: 2, 1>, scalar_prefetch = 0 : i64, scratch_operands = 0 : i64, tpu.core_type = #tpu.core_type<tc>, window_params = [{transform_indices = @transform_0, window_bounds = array<i64: 16, 128>}, {transform_indices = @transform_1, window_bounds = array<i64: 16, 128>}, {transform_indices = @transform_2, window_bounds = array<i64: 16, 128>}, {transform_indices = @transform_3, window_bounds = array<i64: 1, 8, 128>}, {transform_indices = @transform_4, window_bounds = array<i64: 1, 8, 128>}]} {
    %c0_i32 = arith.constant 0 : i32
    %0 = arith.cmpi eq, %arg1, %c0_i32 : i32
    %1 = arith.extui %0 : i1 to i32
    %c0_i32_0 = arith.constant 0 : i32
    %2 = arith.cmpi ne, %1, %c0_i32_0 : i32
    scf.if %2 {
      %cst_22 = arith.constant 0.000000e+00 : f32
      %38 = vector.broadcast %cst_22 : f32 to vector<1x8x128xf32>
      %c0_23 = arith.constant 0 : index
      %c0_24 = arith.constant 0 : index
      %c0_25 = arith.constant 0 : index
      %39 = vector.load %arg5[%c0_23, %c0_24, %c0_25] : memref<1x8x128xf32, #tpu.memory_space<vmem>>, vector<1x8x128xf32>
      tpu.vector_store %arg5[%c0_23, %c0_24, %c0_25], %38 {strides = array<i32>} : memref<1x8x128xf32, #tpu.memory_space<vmem>>, vector<1x8x128xf32>,
      %cst_26 = arith.constant 0.000000e+00 : f32
      %40 = vector.broadcast %cst_26 : f32 to vector<1x8x128xf32>
      %c0_27 = arith.constant 0 : index
      %c0_28 = arith.constant 0 : index
      %c0_29 = arith.constant 0 : index
      %41 = vector.load %arg6[%c0_27, %c0_28, %c0_29] : memref<1x8x128xf32, #tpu.memory_space<vmem>>, vector<1x8x128xf32>
      tpu.vector_store %arg6[%c0_27, %c0_28, %c0_29], %40 {strides = array<i32>} : memref<1x8x128xf32, #tpu.memory_space<vmem>>, vector<1x8x128xf32>,
    } else {
    }
    %c1_i32 = arith.constant 1 : i32
    %3 = arith.muli %arg0, %c1_i32 : i32
    %4 = arith.addi %3, %arg1 : i32
    %c16_i32 = arith.constant 16 : i32
    %5 = arith.muli %4, %c16_i32 : i32
    %6 = tpu.iota {dimensions = array<i32: 0>} : vector<16x128xi32>
    %7 = vector.broadcast %5 : i32 to vector<16x128xi32>
    %8 = arith.addi %6, %7 : vector<16x128xi32>
    %c16_i32_1 = arith.constant 16 : i32
    %9 = vector.broadcast %c16_i32_1 : i32 to vector<16x128xi32>
    %10 = arith.cmpi slt, %8, %9 : vector<16x128xi32>
    %c0 = arith.constant 0 : index
    %c0_2 = arith.constant 0 : index
    %11 = vector.load %arg2[%c0, %c0_2] : memref<16x128xf32, #tpu.memory_space<vmem>>, vector<16x128xf32>
    %c0_3 = arith.constant 0 : index
    %c0_4 = arith.constant 0 : index
    %12 = vector.load %arg3[%c0_3, %c0_4] : memref<16x128xf32, #tpu.memory_space<vmem>>, vector<16x128xf32>
    %c0_5 = arith.constant 0 : index
    %c0_6 = arith.constant 0 : index
    %13 = vector.load %arg4[%c0_5, %c0_6] : memref<16x128xf32, #tpu.memory_space<vmem>>, vector<16x128xf32>
    %14 = arith.subf %11, %12 : vector<16x128xf32>
    %15 = arith.subf %11, %12 : vector<16x128xf32>
    %16 = arith.mulf %14, %15 : vector<16x128xf32>
    %c0_7 = arith.constant 0 : index
    %c0_8 = arith.constant 0 : index
    %c0_9 = arith.constant 0 : index
    %17 = vector.load %arg5[%c0_7, %c0_8, %c0_9] : memref<1x8x128xf32, #tpu.memory_space<vmem>>, vector<1x8x128xf32>
    %18 = arith.mulf %16, %13 : vector<16x128xf32>
    %cst = arith.constant 0.000000e+00 : f32
    %19 = vector.broadcast %cst : f32 to vector<16x128xf32>
    %20 = arith.select %10, %18, %19 : vector<16x128xi1>, vector<16x128xf32>
    %21 = vector.shape_cast %20 : vector<16x128xf32> to vector<1x16x128xf32>
    %cst_10 = arith.constant dense<0.000000e+00> : vector<1xf32>
    %22 = vector.multi_reduction <add>, %21, %cst_10 [1, 2] : vector<1x16x128xf32> to vector<1xf32>
    %23 = vector.shape_cast %22 : vector<1xf32> to vector<1x1x1xf32>
    %24 = vector.extract %23[0, 0, 0] : f32 from vector<1x1x1xf32>
    %25 = vector.broadcast %24 : f32 to vector<1x8x128xf32>
    %26 = arith.addf %17, %25 : vector<1x8x128xf32>
    %c0_11 = arith.constant 0 : index
    %c0_12 = arith.constant 0 : index
    %c0_13 = arith.constant 0 : index
    %27 = vector.load %arg5[%c0_11, %c0_12, %c0_13] : memref<1x8x128xf32, #tpu.memory_space<vmem>>, vector<1x8x128xf32>
    tpu.vector_store %arg5[%c0_11, %c0_12, %c0_13], %26 {strides = array<i32>} : memref<1x8x128xf32, #tpu.memory_space<vmem>>, vector<1x8x128xf32>,
    %c0_14 = arith.constant 0 : index
    %c0_15 = arith.constant 0 : index
    %c0_16 = arith.constant 0 : index
    %28 = vector.load %arg6[%c0_14, %c0_15, %c0_16] : memref<1x8x128xf32, #tpu.memory_space<vmem>>, vector<1x8x128xf32>
    %cst_17 = arith.constant 0.000000e+00 : f32
    %29 = vector.broadcast %cst_17 : f32 to vector<16x128xf32>
    %30 = arith.select %10, %13, %29 : vector<16x128xi1>, vector<16x128xf32>
    %31 = vector.shape_cast %30 : vector<16x128xf32> to vector<1x16x128xf32>
    %cst_18 = arith.constant dense<0.000000e+00> : vector<1xf32>
    %32 = vector.multi_reduction <add>, %31, %cst_18 [1, 2] : vector<1x16x128xf32> to vector<1xf32>
    %33 = vector.shape_cast %32 : vector<1xf32> to vector<1x1x1xf32>
    %34 = vector.extract %33[0, 0, 0] : f32 from vector<1x1x1xf32>
    %35 = vector.broadcast %34 : f32 to vector<1x8x128xf32>
    %36 = arith.addf %28, %35 : vector<1x8x128xf32>
    %c0_19 = arith.constant 0 : index
    %c0_20 = arith.constant 0 : index
    %c0_21 = arith.constant 0 : index
    %37 = vector.load %arg6[%c0_19, %c0_20, %c0_21] : memref<1x8x128xf32, #tpu.memory_space<vmem>>, vector<1x8x128xf32>
    tpu.vector_store %arg6[%c0_19, %c0_20, %c0_21], %36 {strides = array<i32>} : memref<1x8x128xf32, #tpu.memory_space<vmem>>, vector<1x8x128xf32>,
    return
  }
  func.func @transform_0(%arg0: i32, %arg1: i32) -> (i32, i32) {
    %c1_i32 = arith.constant 1 : i32
    %0 = arith.muli %arg0, %c1_i32 : i32
    %1 = arith.addi %0, %arg1 : i32
    %c0_i32 = arith.constant 0 : i32
    %2 = arith.minsi %1, %c0_i32 : i32
    %c0_i32_0 = arith.constant 0 : i32
    %c0_i32_1 = arith.constant 0 : i32
    return %2, %c0_i32_0 : i32, i32
  }
  func.func @transform_1(%arg0: i32, %arg1: i32) -> (i32, i32) {
    %c1_i32 = arith.constant 1 : i32
    %0 = arith.muli %arg0, %c1_i32 : i32
    %1 = arith.addi %0, %arg1 : i32
    %c0_i32 = arith.constant 0 : i32
    %2 = arith.minsi %1, %c0_i32 : i32
    %c0_i32_0 = arith.constant 0 : i32
    %c0_i32_1 = arith.constant 0 : i32
    return %2, %c0_i32_0 : i32, i32
  }
  func.func @transform_2(%arg0: i32, %arg1: i32) -> (i32, i32) {
    %c1_i32 = arith.constant 1 : i32
    %0 = arith.muli %arg0, %c1_i32 : i32
    %1 = arith.addi %0, %arg1 : i32
    %c0_i32 = arith.constant 0 : i32
    %2 = arith.minsi %1, %c0_i32 : i32
    %c0_i32_0 = arith.constant 0 : i32
    %c0_i32_1 = arith.constant 0 : i32
    return %2, %c0_i32_0 : i32, i32
  }
  func.func @transform_3(%arg0: i32, %arg1: i32) -> (i32, i32, i32) {
    %c0_i32 = arith.constant 0 : i32
    %c0_i32_0 = arith.constant 0 : i32
    %c0_i32_1 = arith.constant 0 : i32
    return %arg0, %c0_i32, %c0_i32_0 : i32, i32, i32
  }
  func.func @transform_4(%arg0: i32, %arg1: i32) -> (i32, i32, i32) {
    %c0_i32 = arith.constant 0 : i32
    %c0_i32_0 = arith.constant 0 : i32
    %c0_i32_1 = arith.constant 0 : i32
    return %arg0, %c0_i32, %c0_i32_0 : i32, i32, i32
  }
}

</mosaic_0001>

<bundles_post_ra>
// kernel: tpu_custom_call.1
= control target key start
LH: loop header
LB: loop body
LE: loop exit
PB: predicated region body
PF: predicated region fallthrough
CT: control target
= control target key end

     0   :  { %s1291_s0 = inlined_call_operand.hbm [shape: f32[16,128], index: 0, kind: input, shape index: {}]   ;;  %s1292_s1 = inlined_call_operand.hbm [shape: f32[16,128], index: 1, kind: input, shape index: {}]   ;;  %s1293_s2 = inlined_call_operand.hbm [shape: f32[16,128], index: 2, kind: input, shape index: {}]   ;;  %s1294_s3 = inlined_call_operand.hbm [shape: f32[2,8,128], index: 3, kind: output, shape index: {0}]   ;;  %s1295_s4 = inlined_call_operand.hbm [shape: f32[2,8,128], index: 4, kind: output, shape index: {1}]  }
   0x1   :  { %1303 = sst [smem:[#allocation19_spill]] %s1292_s1 }
   0x2   :  { %10 = vsyncpa [#allocation3], 0 }
   0x3   :  { %12 = vsyncpa [#allocation3 + $0x1], 0 }
   0x4   :  { %13 = vsyncpa [#allocation6], 0 }
   0x5   :  { %15 = vsyncpa [#allocation6 + $0x1], 0 }
   0x6   :  { %16 = vsyncpa [#allocation4], 0 }
   0x7   :  { %18 = vsyncpa [#allocation4 + $0x1], 0 }
   0x8   :  { %19 = vsyncpa [#allocation10], 0 }
   0x9   :  { %21 = vsyncpa [#allocation10 + $0x1], 0  ;;  %s1000_s15 = smov 0   ;;  %s1002_s16 = smov 0  }
   0xa   :  { %s1004_s17 = smov 0   ;;  %s1006_s18 = smov 0  }
   0xb   :  { %s1008_s19 = smov 0   ;;  %s1010_s20 = smov 0  }
   0xc   :  { %s1012_s21 = smov 0   ;;  %s1014_s22 = smov 0  }
   0xd LB: > { %1304 = sst [smem:[#allocation15_spill]] %s946_s17  ;;  %s1039_s23 = sadd.s32 4294967295, %s966_s22   ;;  %s966_s22 = sphi %s1014_s22, %s27_s22   ;;  %s962_s21 = sphi %s1012_s21, %s1327_s21   ;;  %s958_s20 = sphi %s1010_s20, %s1326_s20   ;;  %s954_s19 = sphi %s1008_s19, %s1281_s19   ;;  %s950_s18 = sphi %s1006_s18, %s1330_s18   ;;  %s946_s17 = sphi %s1004_s17, %s1325_s17   ;;  %s942_s16 = sphi %s1002_s16, %s1329_s16   ;;  %s938_s15 = sphi %s1000_s15, %s1328_s15  }
   0xe   : > { %1305 = sst [smem:[#allocation16_spill]] %s962_s21  ;;  %s601_s24 = sadd.s32 4294967294, %s966_s22  }
   0xf   : > { %s39_s25 = sadd.s32 1, %s962_s21  ;;  %p935_p1 = scmp.ne.s32.totalorder %s954_s19, 0 }
  0x10   : > { %p41_p0 = scmp.ge.s32.totalorder %s39_s25, 2  ;;  %p60_p2 = scmp.eq.s32.totalorder %s966_s22, 0 }
  0x11   : > { %p65_p3 = scmp.ne.s32.totalorder %s954_s19, %s950_s18  ;;  %p66_p5 = scmp.eq.s32.totalorder %s1039_s23, 0 }
  0x12   : > { %s1332_s25 = smov (%p41_p0, %s39_s25), 0  ;;  %p1048_p4 = por %p935_p1, %p60_p2 }
  0x13   : > { %1306 = sst [smem:[#allocation17_spill]] %s1332_s25  ;;  %p1053_p6 = por %p66_p5, %p65_p3 }
  0x14   : > { %s139_s28 = ssub.s32 %s962_s21, %s1332_s25  ;;  %s142_s29 = sadd.s32 1, %s946_s17 }
  0x15   : > { %s1308_s27 = scalar_select %p1053_p6, 1, 0 }
  0x16   : > { %p140_p7 = scmp.eq.s32.totalorder %s139_s28, 0  ;;  %p152_p8 = scmp.ne.s32.totalorder %s946_s17, %s942_s16 }
  0x17   : > { %p153_p9 = scmp.eq.s32.totalorder %s1039_s23, 1  ;;  %p158_p10 = scmp.ne.s32.totalorder %s942_s16, %s938_s15 }
  0x18   : > { %s1061_s30 = scalar_select %p140_p7, %s946_s17, %s142_s29  }
  0x19   : > { %p159_p11 = scmp.eq.s32.totalorder %s601_s24, 1  ;;  %p1068_p12 = por %p153_p9, %p152_p8 }
  0x1a   : > { %1309 = sst [smem:[#allocation18_spill]] %s1061_s30  ;;  %p660_p1 = scmp.lt.s32.totalorder %s966_s22, 2 }
  0x1b   : > { %s1310_s5 = scalar_select %p1068_p12, 1, 0 }
  0x1c   : > { %p1073_p0 = por %p159_p11, %p158_p10  ;;  %p1080_p2 = pnand %p660_p1, %p1048_p4 }
  0x1d   : > { %s229_s8 = sand.u32 1, %s966_s22   ;;  %s968_s9 = smov [#allocation5]  }
  0x1e   : > { %s1311_s6 = scalar_select %p1073_p0, 1, 0 }
  0x1f   : > { %s1312_s7 = scalar_select %p1080_p2, 1, 0 }
  0x20   : > { %s243_s10 = sshll.u32 %s968_s9, 4  ;;  %s1088_s11 = scalar_lea.sflag [#allocation6], %s229_s8  ;;  %s1085_s10 = int_to_ptr.vmem [resolvable:$true] %s243_s10 }
  0x21   : > { %s1313_s1 = sld [smem:[#allocation19_spill]]  ;;  %p1098_p5 = pneg %p1080_p2 }
  0x27   : > { %s737_s14 = scalar_lea.hbm %s1313_s1, 256 }
  0x28   : > { %p738_p4 = scmp.ne.s32.totalorder %s1313_s1, %s737_s14  ;;  %p744_p9 = scmp.lt.u32.totalorder %s737_s14, %s737_s14 }
  0x29   : > { %p746_p10 = scmp.lt.u32.totalorder %s737_s14, %s1313_s1 }
  0x2a   : > { %p740_p7 = pnand %p1098_p5, %p738_p4 }
  0x2b   : > { %p747_p11 = por %p746_p10, %p744_p9 }
  0x2c   : > { %p741_p8 = pneg %p740_p7 }
  0x2e   : > { %p748_p1 = pnand %p747_p11, %p741_p8 }
  0x30   : > { %751 = shalt.err (!%p748_p1)
}
  0x31   : > { %s752_s8 = scalar_lea.vmem %s1085_s10, 256  ;;  %s759_s9 = scalar_lea.vmem %s1085_s10, 512 }
  0x32   : > { %p753_p13 = scmp.ne.s32.totalorder %s1085_s10, %s752_s8  ;;  %p760_p4 = scmp.lt.s32.totalorder %s1085_s10, %s1085_s10 }
  0x33   : > { %p761_p7 = scmp.lt.s32.totalorder %s759_s9, %s752_s8 }
  0x34   : > { %p755_p3 = pnand %p753_p13, %p1098_p5 }
  0x35   : > { %p762_p12 = por %p761_p7, %p760_p4 }
  0x36   : > { %p756_p0 = pneg %p755_p3 }
  0x38   : > { %p763_p6 = pnand %p762_p12, %p756_p0 }
  0x3a   : > { %766 = shalt.err (!%p763_p6)
}
  0x3b   : > { %s969_s12 = smov 128   ;;  %s970_s13 = smov 8  }
  0x3c   : > { %649 = dma.hbm_to_vmem [thread:$0]  (!%p1080_p2), %s1313_s1, 256, %s1085_s10, %s1088_s11, %s969_s12, %s969_s12, %s970_s13  }
  0x3d   : > { %p275_p13 = scmp.lt.s32.totalorder %s966_s22, 3  ;;  %p1315_p3 = scmp.ge.s32.totalorder %s966_s22, 1 }
  0x3e   : > { %s971_s28 = smov [#allocation2]   ;;  %s767_s25 = scalar_lea.hbm %s1291_s0, 256 }
  0x3f   : > { %p1127_p12 = pnand %p1315_p3, %p275_p13  ;;  %s219_s29 = sshll.u32 %s971_s28, 4  ;;  %s220_s29 = int_to_ptr.vmem [resolvable:$true] %s219_s29 }
  0x40   : > { %p768_p6 = scmp.ne.s32.totalorder %s1291_s0, %s767_s25  ;;  %p774_p9 = scmp.lt.u32.totalorder %s767_s25, %s767_s25 }
  0x41   : > { %s1316_s24 = scalar_select %p1127_p12, 1, 0 }
  0x42   : > { %p770_p0 = pnand %p768_p6, %p1098_p5  ;;  %p776_p10 = scmp.lt.u32.totalorder %s767_s25, %s1291_s0 }
  0x44   : > { %p771_p8 = pneg %p770_p0  ;;  %p777_p11 = por %p776_p10, %p774_p9 }
  0x46   : > { %p778_p1 = pnand %p777_p11, %p771_p8 }
  0x48   : > { %781 = shalt.err (!%p778_p1)
}
  0x49   : > { %s782_s18 = scalar_lea.vmem %s220_s29, 256  ;;  %s789_s28 = scalar_lea.vmem %s220_s29, 512 }
  0x4a   : > { %p783_p4 = scmp.ne.s32.totalorder %s220_s29, %s782_s18  ;;  %p790_p3 = scmp.lt.s32.totalorder %s220_s29, %s220_s29 }
  0x4b   : > { %p791_p12 = scmp.lt.s32.totalorder %s789_s28, %s782_s18 }
  0x4c   : > { %p785_p7 = pnand %p783_p4, %p1098_p5 }
  0x4d   : > { %p792_p2 = por %p791_p12, %p790_p3 }
  0x4e   : > { %p786_p13 = pneg %p785_p7 }
  0x50   : > { %p793_p6 = pnand %p792_p2, %p786_p13 }
  0x52   : > { %796 = shalt.err (!%p793_p6)
}
  0x53   : > { %p1317_p0 = scmp.ne.s32.totalorder %s1312_s7, 0  ;;  %s972_s30 = smov [#allocation7]  }
  0x54   : > { %s267_s8 = sshll.u32 %s972_s30, 4  ;;  %s797_s14 = scalar_lea.hbm %s1293_s2, 256  ;;  %s268_s8 = int_to_ptr.vmem [resolvable:$true] %s267_s8 }
  0x55   : > { %646 = dma.hbm_to_vmem [thread:$0]  (!%p1317_p0), %s1291_s0, 256, %s220_s29, [#allocation3], %s969_s12, %s969_s12, %s970_s13  }
  0x56   : > { %p798_p2 = scmp.ne.s32.totalorder %s1293_s2, %s797_s14  ;;  %p804_p9 = scmp.lt.u32.totalorder %s797_s14, %s797_s14 }
  0x57   : > { %p806_p10 = scmp.lt.u32.totalorder %s797_s14, %s1293_s2 }
  0x58   : > { %p800_p12 = pnand %p798_p2, %p1098_p5 }
  0x59   : > { %p807_p11 = por %p806_p10, %p804_p9 }
  0x5a   : > { %p801_p8 = pneg %p800_p12 }
  0x5c   : > { %p808_p1 = pnand %p807_p11, %p801_p8 }
  0x5e   : > { %811 = shalt.err (!%p808_p1)
}
  0x5f   : > { %s812_s29 = scalar_lea.vmem %s268_s8, 256  ;;  %s819_s21 = scalar_lea.vmem %s268_s8, 512 }
  0x60   : > { %p813_p4 = scmp.ne.s32.totalorder %s268_s8, %s812_s29  ;;  %p820_p3 = scmp.lt.s32.totalorder %s268_s8, %s268_s8 }
  0x61   : > { %p821_p6 = scmp.lt.s32.totalorder %s819_s21, %s812_s29 }
  0x62   : > { %p815_p7 = pnand %p813_p4, %p1098_p5 }
  0x63   : > { %p822_p0 = por %p821_p6, %p820_p3 }
  0x64   : > { %p816_p13 = pneg %p815_p7 }
  0x66   : > { %p823_p2 = pnand %p822_p0, %p816_p13 }
  0x68   : > { %826 = shalt.err (!%p823_p2)
}
  0x69   : > { %p1318_p12 = scmp.ne.s32.totalorder %s1312_s7, 0  ;;  %p1319_p8 = scmp.ne.s32.totalorder %s1316_s24, 0 }
  0x6a   : > { %s281_s26 = sand.u32 (!%p1319_p8), 1, %s954_s19   ;;  %p1320_p5 = scmp.ne.s32.totalorder (!%p1319_p8), %s1308_s27, 0 }
  0x6b   : > { %652 = dma.hbm_to_vmem [thread:$0]  (!%p1318_p12), %s1293_s2, 256, %s268_s8, %s1088_s11, %s969_s12, %s969_s12, %s970_s13  }
  0x6c   : > { %279 = sbr.rel (%p1319_p8) target bundleno = 376 (0x178), region = 32  ;;  %s614_s25 = sshll.u32 (!%p1319_p8), %s281_s26, 4 }
  0x6d   : > { %s282_s30 = scalar_lea.sflag (!%p1319_p8), [#allocation3], %s281_s26  ;;  %s285_s9 = scalar_lea.vmem (!%p1319_p8), [#allocation2], %s614_s25 }
  0x73   : > { %920 = dma.done.wait (%p1320_p5), %s282_s30, 256  }
  0x74   : > { %922 = vsyncadd (%p1320_p5), %s282_s30, 4294967040  ;;  %s290_s7 = sand.u32 1, %s1039_s23   ;;  %s294_s14 = scalar_lea.vmem [#allocation5], %s614_s25 }
  0x75   : > { %s291_s10 = scalar_lea.sflag [#allocation6], %s290_s7 }
  0x76   : > { %924 = dma.done.wait (%p1320_p5), %s291_s10, 512  }
  0x77   : > { %926 = vsyncadd (%p1320_p5), %s291_s10, 4294966784  ;;  %v363_v0 = vlaneseq  ;;  %s619_s11 = sshll.u32 %s958_s20, 4  ;;  %v371_v5 = vld [vmem:[%s285_s9] sm:$0xff]  ;;  %v372_v6 = vld [vmem:[%s285_s9 + $0x8] sm:$0xff]  ;;  %s303_s23 = scalar_lea.vmem [#allocation7], %s614_s25 }
  0x78   : > { %v366_v3 = vstv %s619_s11  ;;  %v373_v7 = vld [vmem:[%s294_s14] sm:$0xff]  ;;  %v374_v9 = vld [vmem:[%s294_s14 + $0x8] sm:$0xff]  ;;  %s1188_s27 = sand.u32 1, %s942_s16   ;;  %s622_s13 = sshll.u32 %s958_s20, 7 }
  0x79   : > { %v364_v1 = vshrl.u32 %v363_v0, 7  ;;  %v377_v10 = vsub.f32 %v371_v5, %v373_v7  ;;  %v375_v11 = vld [vmem:[%s303_s23] sm:$0xff]  ;;  %v378_v12 = vsub.f32 %v372_v6, %v374_v9  ;;  %v376_v13 = vld [vmem:[%s303_s23 + $0x8] sm:$0xff]  ;;  %s617_s12 = sshll.u32 %s1188_s27, 3  ;;  %s1197_s21 = scalar_lea.hbm %s1294_s3, %s622_s13 }
  0x7a   : > { %s335_s24 = scalar_lea.vmem [#allocation8], %s617_s12  ;;  %s1201_s1 = scalar_lea.vmem [#allocation9], %s617_s12 }
  0x7b   : > { %v365_v2 = vadd.s32 8, %v364_v1  ;;  %v367_v4 = vadd.s32 %v366_v3, %v364_v1  ;;  %v379_v14 = vmul.f32 %v377_v10, %v377_v10  ;;  %v380_v15 = vmul.f32 %v378_v12, %v378_v12  ;;  %s434_s8 = sshll.u32 %s335_s24, 4  ;;  %s447_s17 = sshll.u32 %s1201_s1, 4  ;;  %s1199_s8 = int_to_ptr.vmem [resolvable:$true] %s434_s8  ;;  %s1238_s17 = int_to_ptr.vmem [resolvable:$true] %s447_s17 }
  0x7c   : > { %s416_s25 = scalar_lea.sflag [#allocation4], %s1188_s27  ;;  %s827_s30 = scalar_lea.vmem %s1199_s8, 128 }
  0x7d   : > { %v368_v8 = vadd.s32 %v366_v3, %v365_v2  ;;  %vm369_vm0 = vcmp.lt.s32.totalorder %v367_v4, 16  ;;  %v382_v16 = vmul.f32 %v379_v14, %v375_v11  ;;  %v383_v17 = vmul.f32 %v380_v15, %v376_v13  ;;  %p828_p0 = scmp.ne.s32.totalorder %s1199_s8, %s827_s30  ;;  %p1321_p9 = scmp.ne.s32.totalorder %s1310_s5, 0 }
  0x7e   : > { %v400_v20 = vsel %vm369_vm0, %v375_v11, 0.0  ;;  %s973_s9 = smov [#allocation8]  }
  0x7f   : > { %vm370_vm1 = vcmp.lt.s32.totalorder %v368_v8, 16  ;;  %v384_v18 = vsel %vm369_vm0, %v382_v16, 0.0  ;;  %p829_p10 = pnand %p828_p0, %p1321_p9  ;;  %s831_s7 = sshll.u32 %s973_s9, 4  ;;  %s832_s7 = int_to_ptr.vmem [resolvable:$false] %s831_s7 }
  0x80   : > { %v385_v19 = vsel %vm370_vm1, %v383_v17, 0.0  ;;  %v401_v21 = vsel %vm370_vm1, %v376_v13, 0.0  ;;  %s833_s10 = scalar_lea.vmem %s832_s7, 256  ;;  %p834_p1 = scmp.lt.s32.totalorder %s1199_s8, %s832_s7 }
  0x81   : > { %v386_v22 = vadd.f32 %v385_v19, %v384_v18  ;;  %v402_v23 = vadd.f32 %v401_v21, %v400_v20  ;;  %p830_p11 = pneg %p829_p10  ;;  %p835_p4 = scmp.lt.s32.totalorder %s833_s10, %s827_s30 }
  0x83   : > { %387 = vadd.xlane.f32.xlu0 %v386_v22  ;;  %p836_p7 = por %p835_p4, %p834_p1 }
  0x85   : > { %p837_p13 = pnand %p836_p7, %p830_p11 }
  0x87   : > { %403 = vadd.xlane.f32.xlu0 %v402_v23 }
 0x110   : > { %v388_v24 = vpop.xlane.xlu0 %387 }
 0x111   : > { %v389_v25 = vrot.slane %v388_v24, 4 }
 0x113   : > { %v390_v26 = vadd.f32 %v389_v25, %v388_v24 }
 0x114   : > { %v404_v27 = vpop.xlane.xlu0 %403 }
 0x115   : > { %v391_v28 = vrot.slane %v390_v26, 2  ;;  %v405_v29 = vrot.slane %v404_v27, 4 }
 0x117   : > { %v406_v30 = vadd.f32 %v405_v29, %v404_v27  ;;  %v392_v31 = vadd.f32 %v391_v28, %v390_v26 }
 0x119   : > { %v407_v32 = vrot.slane %v406_v30, 2  ;;  %v393_v33 = vrot.slane %v392_v31, 1 }
 0x11b   : > { %v408_v34 = vadd.f32 %v407_v32, %v406_v30  ;;  %v394_v35 = vadd.f32 %v393_v33, %v392_v31 }
 0x11d   : > { %629 = vpush %v394_v35  ;;  %v409_v36 = vrot.slane %v408_v34, 1 }
 0x11f   : > { %v410_v37 = vadd.f32 %v409_v36, %v408_v34 }
 0x121   : > { %631 = vpush %v410_v37 }
 0x14e   : > { %s630_s18 = spop %629 }
 0x14f   : > { %v396_v38 = vstv %s630_s18 }
 0x150   : > { %398 = vst [vmem:[%s335_s24] sm:$0xff] %v396_v38 }
 0x152   : > { %s1204_s26 = spop %631 }
 0x153   : > { %v412_v39 = vstv %s1204_s26 }
 0x154   : > { %840 = shalt.err (!%p837_p13)
}
 0x155   : > { %s841_s14 = scalar_lea.hbm %s1197_s21, 128  ;;  %s845_s12 = scalar_lea.hbm %s1294_s3, 256 }
 0x156   : > { %p842_p3 = scmp.ne.s32.totalorder %s1197_s21, %s841_s14  ;;  %p846_p12 = scmp.lt.u32.totalorder %s1197_s21, %s1294_s3 }
 0x157   : > { %p847_p8 = scmp.lt.u32.totalorder %s845_s12, %s841_s14  ;;  %p849_p0 = scmp.lt.u32.totalorder %s841_s14, %s1197_s21 }
 0x158   : > { %p843_p6 = pnand %p842_p3, %p1321_p9 }
 0x159   : > { %p848_p5 = por %p847_p8, %p846_p12 }
 0x15a   : > { %p844_p2 = pneg %p843_p6 }
 0x15b   : > { %p850_p10 = por %p849_p0, %p848_p5 }
 0x15d   : > { %p851_p11 = pnand %p850_p10, %p844_p2 }
 0x15f   : > { %854 = shalt.err (!%p851_p11)
}
 0x160   : > { %639 = dma.vmem_to_hbm [thread:$0]  (%p1321_p9), %s1199_s8, 128, %s1197_s21, %s416_s25   ;;  %414 = vst [vmem:[%s1201_s1] sm:$0xff] %v412_v39 }
 0x161   : > { %s1234_s26 = scalar_lea.hbm %s1295_s4, %s622_s13  ;;  %s421_s30 = scalar_lea.sflag [#allocation10], %s1188_s27 }
 0x162   : > { %s855_s9 = scalar_lea.vmem %s1238_s17, 128  ;;  %s974_s8 = smov [#allocation9]  }
 0x163   : > { %p856_p1 = scmp.ne.s32.totalorder %s1238_s17, %s855_s9  ;;  %s859_s20 = sshll.u32 %s974_s8, 4  ;;  %s860_s20 = int_to_ptr.vmem [resolvable:$false] %s859_s20 }
 0x164   : > { %s861_s21 = scalar_lea.vmem %s860_s20, 256  ;;  %p862_p13 = scmp.lt.s32.totalorder %s1238_s17, %s860_s20 }
 0x165   : > { %p857_p4 = pnand %p856_p1, %p1321_p9  ;;  %p863_p3 = scmp.lt.s32.totalorder %s861_s21, %s855_s9 }
 0x167   : > { %p858_p7 = pneg %p857_p4  ;;  %p864_p6 = por %p863_p3, %p862_p13 }
 0x169   : > { %p865_p2 = pnand %p864_p6, %p858_p7 }
 0x16b   : > { %868 = shalt.err (!%p865_p2)
}
 0x16c   : > { %s869_s27 = scalar_lea.hbm %s1234_s26, 128  ;;  %s873_s25 = scalar_lea.hbm %s1295_s4, 256 }
 0x16d   : > { %p870_p12 = scmp.ne.s32.totalorder %s1234_s26, %s869_s27  ;;  %p874_p0 = scmp.lt.u32.totalorder %s1234_s26, %s1295_s4 }
 0x16e   : > { %p875_p10 = scmp.lt.u32.totalorder %s873_s25, %s869_s27  ;;  %p877_p1 = scmp.lt.u32.totalorder %s869_s27, %s1234_s26 }
 0x16f   : > { %p871_p8 = pnand %p870_p12, %p1321_p9 }
 0x170   : > { %p876_p11 = por %p875_p10, %p874_p0 }
 0x171   : > { %p872_p5 = pneg %p871_p8 }
 0x172   : > { %p878_p4 = por %p877_p1, %p876_p11 }
 0x174   : > { %p879_p7 = pnand %p878_p4, %p872_p5 }
 0x176   : > { %882 = shalt.err (!%p879_p7)
}
 0x177   : > { %640 = dma.vmem_to_hbm [thread:$0]  (%p1321_p9), %s1238_s17, 128, %s1234_s26, %s421_s30  }
 0x178 PF: > { %s459_s14 = sand.u32 1, %s938_s15   ;;  %p1322_p13 = scmp.ne.s32.totalorder %s1311_s6, 0 }
 0x179   : > { %p1323_p3 = scmp.ge.s32.totalorder %s966_s22, 2  ;;  %s460_s11 = scalar_lea.sflag [#allocation4], %s459_s14 }
 0x17b   : > { %p654_p6 = pnand %p1323_p3, %p1322_p13 }
 0x17d   : > { %928 = dma.done.wait (!%p654_p6), %s460_s11, 128  }
 0x17e   : > { %930 = vsyncadd (!%p654_p6), %s460_s11, 4294967168  ;;  %s469_s23 = scalar_lea.sflag [#allocation10], %s459_s14 }
 0x17f   : > { %932 = dma.done.wait (!%p654_p6), %s469_s23, 128  }
 0x180   : > { %934 = vsyncadd (!%p654_p6), %s469_s23, 4294967168  ;;  %s27_s22 = sadd.s32 1, %s966_s22   ;;  %s1324_s5 = sld [smem:[#allocation15_spill]] }
 0x181   : > { %p24_p2 = scmp.ge.s32.totalorder %s27_s22, 4   ;;  %s1325_s17 = sld [smem:[#allocation18_spill]] }
 0x182   : > { %s1326_s20 = sld [smem:[#allocation16_spill]]  ;;  %s1327_s21 = sld [smem:[#allocation17_spill]] }
 0x183   : > { %s1328_s15 = smov %s942_s16  ;;  %s1330_s18 = smov %s954_s19 }
 0x184   : > { %s1281_s19 = smov 0   ;;  %26 = sbr.rel (!%p24_p2) target bundleno = 13 (0xd), region = 122 }
 0x186   : > { %s1329_s16 = smov %s1324_s5 }
 0x18b   :  { %474 = vsyncpa [#allocation3], 1 }
 0x18c   :  { %476 = vsyncpa [#allocation3 + $0x1], 1 }
 0x18d   :  { %477 = vsyncpa [#allocation6], 1 }
 0x18e   :  { %479 = vsyncpa [#allocation6 + $0x1], 1 }
 0x18f   :  { %480 = vsyncpa [#allocation4], 1 }
 0x190   :  { %482 = vsyncpa [#allocation4 + $0x1], 1 }
 0x191   :  { %483 = vsyncpa [#allocation10], 1 }
 0x192   :  { %485 = vsyncpa [#allocation10 + $0x1], 1 }

</bundles_post_ra>
